<compile_context>
chip_gen: v7x
topology: tpu7x:2x2x1
jax: 0.10.0
libtpu: 0.0.40
codegen_flags: <defaults>
</compile_context>

<pallas_src>
import functools
import math

import jax
import jax.numpy as jnp
from jax.experimental import pallas as pl
from jax.experimental.pallas import tpu as pltpu


# ----------------------------------------------------------------------------- #
# In-kernel math helpers
# ----------------------------------------------------------------------------- #
def _silu(y):
    return y * (1.0 / (1.0 + jnp.exp(-y)))


def _mish(y):
    # stable softplus: max(y,0) + log(1 + exp(-|y|))
    sp = jnp.maximum(y, 0.0) + jnp.log(1.0 + jnp.exp(-jnp.abs(y)))
    return y * jnp.tanh(sp)


def _apply_act(y, act):
    if act == "none":
        return y
    if act == "relu":
        return jnp.maximum(y, 0.0)
    if act == "silu":
        return _silu(y)
    if act == "mish":
        return _mish(y)
    raise ValueError(act)


def _mm(a, b):
    return jnp.dot(a, b, preferred_element_type=jnp.float32)


# ----------------------------------------------------------------------------- #
# Kernel 1: fused MLP chain  y = actK(... act1(x @ W1 + b1) ... @ WK + bK)
#   row-tiled grid, weights resident, dimension_semantics=("parallel",)
# ----------------------------------------------------------------------------- #
def _mlp_kernel(*refs, acts):
    x_ref = refs[0]
    o_ref = refs[-1]
    wb = refs[1:-1]
    y = x_ref[...]
    for i, act in enumerate(acts):
        w = wb[2 * i][...]
        b = wb[2 * i + 1][...]
        y = _apply_act(_mm(y, w) + b, act)
    o_ref[...] = y


def pallas_mlp(x, layers, acts, block_rows=128):
    m, k = x.shape
    bm = m if m <= block_rows else block_rows
    grid = (pl.cdiv(m, bm),)
    in_specs = [pl.BlockSpec((bm, k), lambda i: (i, 0))]
    args = [x.astype(jnp.float32)]
    for (w, b) in layers:
        in_specs.append(pl.BlockSpec(w.shape, lambda i: (0, 0)))
        in_specs.append(pl.BlockSpec(b.shape, lambda i: (0, 0)))
        args.append(w)
        args.append(b)
    n_out = layers[-1][0].shape[1]
    return pl.pallas_call(
        functools.partial(_mlp_kernel, acts=tuple(acts)),
        grid=grid,
        in_specs=in_specs,
        out_specs=pl.BlockSpec((bm, n_out), lambda i: (i, 0)),
        out_shape=jax.ShapeDtypeStruct((m, n_out), jnp.float32),
        compiler_params=pltpu.CompilerParams(dimension_semantics=("parallel",)),
    )(*args)


# ----------------------------------------------------------------------------- #
# Shared E_GCL body (operates on loaded arrays, used inside the fused kernels)
#   h [N,F], coord [N,3], row/col [E,N] f32 one-hot, inv_cnt [N,1], ea [E,De]
#   weights: (we_s, we_t, we_r, we_a, be1, we2, be2, wc1, bc1, wc2,
#             wn_h, wn_a, bn1, wn2, bn2)
# ----------------------------------------------------------------------------- #
def _egcl_body(h, coord, row, col, inv_cnt, ea, p, *, normalize, scalar_edge,
               eps=1e-8):
    (we_s, we_t, we_r, we_a, be1, we2, be2,
     wc1, bc1, wc2, wn_h, wn_a, bn1, wn2, bn2) = p
    f = h.shape[1]

    # fused endpoint gather: one matmul per endpoint, then lane slices
    hx = jnp.concatenate([h, coord], axis=-1)                       # [N, F+3]
    src = _mm(row, hx)                                              # [E, F+3]
    tgt = _mm(col, hx)
    src_h, src_c = src[:, :f], src[:, f:]
    tgt_h, tgt_c = tgt[:, :f], tgt[:, f:]

    # coord2radial
    cdiff = src_c - tgt_c
    radial = jnp.sum(cdiff * cdiff, axis=-1, keepdims=True)         # [E, 1]
    if normalize:
        cdiff = cdiff * pl.reciprocal(jnp.sqrt(radial) + eps, approx=True)

    # edge_mlp([source, target, radial, edge_attr])
    if scalar_edge:
        ea_term = ea * we_a                                         # [E,1] * [1,H]
    else:
        ea_term = _mm(ea, we_a)
    m1 = _silu(_mm(src_h, we_s) + _mm(tgt_h, we_t) + radial * we_r + ea_term + be1)
    edge_feat = _silu(_mm(m1, we2) + be2)                           # [E, H]

    # coord_mlp -> per-edge translation
    t = _silu(_mm(edge_feat, wc1) + bc1)
    t = _mm(t, wc2)                                                 # [E, 1]
    trans = cdiff * t                                               # [E, 3]

    # fused segment scatter (sum over edges grouped by row): contract the E axis
    et = jnp.concatenate([edge_feat, trans], axis=-1)               # [E, H+3]
    scat = jax.lax.dot_general(row, et, (((0,), (0,)), ((), ())),
                               preferred_element_type=jnp.float32)  # [N, H+3]
    hdim = edge_feat.shape[1]
    agg_h = scat[:, :hdim]                                          # segment sum
    agg_c = scat[:, hdim:] * inv_cnt                                # segment mean
    coord_new = coord + agg_c

    # node_mlp([h, agg_h]) + residual
    n1 = _silu(_mm(h, wn_h) + _mm(agg_h, wn_a) + bn1)
    h_new = h + (_mm(n1, wn2) + bn2)
    return h_new, coord_new


# ----------------------------------------------------------------------------- #
# Kernel 2: fused condition encoder
#   embedding_in -> 3x E_GCL (no FiLM, normalize=False) -> embedding_out
#   -> global_max_pool -> fc                    (one pallas_call, data stays in VMEM)
# ----------------------------------------------------------------------------- #
def _cond_kernel(*refs, n_layers, batch_size):
    (c_ref, coord_ref, row_ref, col_ref, invc_ref, ea_ref, mask_ref,
     wi_ref, bi_ref) = refs[:9]
    stacked = refs[9:24]
    wo_ref, bo_ref, wfc_ref, bfc_ref = refs[24:28]
    o_ref = refs[28]

    h = _mm(c_ref[...], wi_ref[...]) + bi_ref[...]                  # embedding_in
    coord = coord_ref[...]
    row = row_ref[...].astype(jnp.float32)
    col = col_ref[...].astype(jnp.float32)
    inv_cnt = invc_ref[...]
    ea = ea_ref[...]

    for l in range(n_layers):
        p = tuple(s[l] for s in stacked)
        h, coord = _egcl_body(h, coord, row, col, inv_cnt, ea, p,
                              normalize=False, scalar_edge=True)

    h = _mm(h, wo_ref[...]) + bo_ref[...]                           # embedding_out

    # global_max_pool, 2D masked running max per graph (no (G,N,F) broadcast)
    mask = mask_ref[...]                                            # [N, G]
    rows = []
    for g in range(batch_size):
        m = mask[:, g:g + 1]                                        # [N, 1]
        rows.append(jnp.max(jnp.where(m > 0.5, h, -3.0e38),
                            axis=0, keepdims=True))                 # [1, H]
    pooled = jnp.concatenate(rows, axis=0)                          # [G, H]
    o_ref[...] = _mm(pooled, wfc_ref[...]) + bfc_ref[...]           # fc


def pallas_cond_encoder(c_in, coord, row_oh, col_oh, inv_cnt, edge_attr, mask_ng,
                        w_in, b_in, stacked, w_out, b_out, w_fc, b_fc,
                        n_layers, batch_size):
    out_dim = w_fc.shape[1]
    return pl.pallas_call(
        functools.partial(_cond_kernel, n_layers=n_layers, batch_size=batch_size),
        out_shape=jax.ShapeDtypeStruct((batch_size, out_dim), jnp.float32),
    )(c_in, coord, row_oh, col_oh, inv_cnt, edge_attr, mask_ng,
      w_in, b_in, *stacked, w_out, b_out, w_fc, b_fc)


# ----------------------------------------------------------------------------- #
# Kernel 3: fused denoising EGNN
#   node_embedding + concat(timestep emb) + edge_embedding +
#   num_layers x (FiLM modulation + E_GCL, normalize=True)     (one pallas_call)
# ----------------------------------------------------------------------------- #
def _denoise_kernel(*refs, n_layers):
    (x_ref, te_ref, coord_ref, row_ref, col_ref, invc_ref, ea_ref,
     sc_ref, bia_ref, wne_ref, bne_ref, wee_ref, bee_ref) = refs[:13]
    stacked = refs[13:28]
    h_out_ref, x_out_ref = refs[28:30]

    # node embedding + timestep embedding concat (lane-dense single store later)
    h = jnp.concatenate([_mm(x_ref[...], wne_ref[...]) + bne_ref[...],
                         te_ref[...]], axis=-1)                     # [N, F]
    # edge embedding (Linear(1, hidden)) fused in: [E,1] * [1,H] + [1,H]
    h_e = ea_ref[...] * wee_ref[...] + bee_ref[...]                 # [E, H]

    coord = coord_ref[...]
    row = row_ref[...].astype(jnp.float32)
    col = col_ref[...].astype(jnp.float32)
    inv_cnt = invc_ref[...]

    for l in range(n_layers):
        p = tuple(s[l] for s in stacked)
        h = sc_ref[l] * h + bia_ref[l]                              # FiLM (per node)
        h, coord = _egcl_body(h, coord, row, col, inv_cnt, h_e, p,
                              normalize=True, scalar_edge=False)

    h_out_ref[...] = h
    x_out_ref[...] = coord


def pallas_denoise(x_flat, te_node, coord, row_oh, col_oh, inv_cnt, edge_attr,
                   scales_n, biases_n, w_nemb, b_nemb, w_eemb, b_eemb, stacked,
                   n_layers):
    n = x_flat.shape[0]
    f = w_nemb.shape[1] + te_node.shape[1]
    return pl.pallas_call(
        functools.partial(_denoise_kernel, n_layers=n_layers),
        out_shape=(jax.ShapeDtypeStruct((n, f), jnp.float32),
                   jax.ShapeDtypeStruct((n, coord.shape[1]), jnp.float32)),
    )(x_flat, te_node, coord, row_oh, col_oh, inv_cnt, edge_attr,
      scales_n, biases_n, w_nemb, b_nemb, w_eemb, b_eemb, *stacked)


# ----------------------------------------------------------------------------- #
# Parameter construction (deterministic, mimics nn.Linear default init shapes)
# ----------------------------------------------------------------------------- #
def init_linear(key, fan_in, fan_out):
    kw, kb = jax.random.split(key)
    bound = 1.0 / math.sqrt(fan_in)
    w = jax.random.uniform(kw, (fan_in, fan_out), jnp.float32, -bound, bound)
    b = jax.random.uniform(kb, (1, fan_out), jnp.float32, -bound, bound)
    return w, b


def init_egcl(key, input_nf, output_nf, hidden_nf, edges_in_d):
    ks = jax.random.split(key, 6)
    edge_in = 2 * input_nf + 1 + edges_in_d
    we1, be1 = init_linear(ks[0], edge_in, hidden_nf)
    we_s = we1[:input_nf]
    we_t = we1[input_nf:2 * input_nf]
    we_r = we1[2 * input_nf:2 * input_nf + 1]
    we_a = we1[2 * input_nf + 1:]
    we2, be2 = init_linear(ks[1], hidden_nf, hidden_nf)
    wc1, bc1 = init_linear(ks[2], hidden_nf, hidden_nf)
    bound = 0.001 * math.sqrt(6.0 / (hidden_nf + 1))     # xavier_uniform gain=0.001
    wc2 = jax.random.uniform(ks[3], (hidden_nf, 1), jnp.float32, -bound, bound)
    wn1, bn1 = init_linear(ks[4], hidden_nf + input_nf, hidden_nf)
    wn_h = wn1[:input_nf]
    wn_a = wn1[input_nf:]
    wn2, bn2 = init_linear(ks[5], hidden_nf, output_nf)
    return (we_s, we_t, we_r, we_a, be1, we2, be2,
            wc1, bc1, wc2,
            wn_h, wn_a, bn1, wn2, bn2)


def stack_layers(layer_params):
    """Stack per-layer weight tuples into a tuple of [L, ...] arrays."""
    n_par = len(layer_params[0])
    return tuple(jnp.stack([lp[i] for lp in layer_params]) for i in range(n_par))


def positional_encoding(length, dim):
    position = jnp.arange(length, dtype=jnp.float32)[:, None] + 1.0
    div_term = jnp.exp(jnp.arange(0, dim, 2, dtype=jnp.float32) *
                       -(math.log(10000.0) / dim))
    pe = jnp.zeros((length, dim), jnp.float32)
    pe = pe.at[:, 0::2].set(jnp.sin(position * div_term))
    pe = pe.at[:, 1::2].set(jnp.cos(position * div_term))
    return pe


def build_params(key, cfg):
    hidden = cfg["hidden_dim"]
    dse = cfg["dse_dim"]
    f_dim = hidden + dse
    keys = list(jax.random.split(key, 32))
    ki = iter(keys)
    p = {}
    p["pe"] = positional_encoding(cfg["num_diffusion_steps"], dse)
    p["dse1"] = init_linear(next(ki), dse, dse * 4)
    p["dse2"] = init_linear(next(ki), dse * 4, dse)
    p["node_emb"] = init_linear(next(ki), cfg["node_feature_dim"] * cfg["pred_horizon"], hidden)
    p["edge_emb"] = init_linear(next(ki), cfg["edge_feature_dim"], hidden)

    # EGraphConditionEncoder
    embed_dim = 16
    ce = {}
    ce["id_embedding"] = jax.random.normal(next(ki), (30, embed_dim), jnp.float32)
    cond_in = cfg["cond_feature_dim"] * cfg["obs_horizon"] + embed_dim
    ce["emb_in"] = init_linear(next(ki), cond_in, hidden)                    # EGNN embedding_in
    ce["gcl"] = [init_egcl(next(ki), hidden, hidden, hidden, 1) for _ in range(3)]
    ce["emb_out"] = init_linear(next(ki), hidden, hidden)                    # EGNN embedding_out
    cond_channels = f_dim * 2 * cfg["num_layers"]
    ce["fc"] = init_linear(next(ki), hidden, cond_channels)
    p["cond"] = ce

    p["layers"] = [init_egcl(next(ki), f_dim, f_dim, hidden, hidden)
                   for _ in range(cfg["num_layers"])]
    p["np1"] = init_linear(next(ki), f_dim, hidden)
    p["np2"] = init_linear(next(ki), hidden, hidden)
    p["np3"] = init_linear(next(ki), hidden, cfg["node_feature_dim"] * cfg["pred_horizon"])
    return p


# ----------------------------------------------------------------------------- #
# Forward pass (= ConditionalGraphNoisePred.forward)
# ----------------------------------------------------------------------------- #
def forward(params, cfg, x, edge_index, edge_attr, x_coord, cond, timesteps, batch,
            batch_size):
    n_nodes = x.shape[0]
    hidden = cfg["hidden_dim"]
    num_layers = cfg["num_layers"]
    f_dim = hidden + cfg["dse_dim"]

    x_flat = x.astype(jnp.float32).reshape(n_nodes, -1)
    edge_attr = edge_attr.astype(jnp.float32)[:, None]                 # [E, 1]
    ids = cond[:, 0, -1].astype(jnp.int32)
    cond_feat = cond[:, :, :-1].astype(jnp.float32).reshape(n_nodes, -1)
    x_coord = x_coord.astype(jnp.float32)
    batch = batch.astype(jnp.int32)

    # diffusion-step embedding: pe[timesteps] -> fused (Linear+Mish, Linear) kernel
    te = params["pe"][timesteps]                                       # [G, dse]  (glue gather)
    te = pallas_mlp(te, [params["dse1"], params["dse2"]], ("mish", "none"))
    te_node = te[batch]                                                # [N, dse]  (glue gather)

    # add_self_loops (fill_value = 0.0) -- index glue
    loop_idx = jnp.arange(n_nodes, dtype=edge_index.dtype)
    edge_index = jnp.concatenate([edge_index, jnp.stack([loop_idx, loop_idx])], axis=1)
    edge_attr = jnp.concatenate([edge_attr, jnp.zeros((n_nodes, 1), jnp.float32)], axis=0)

    row = edge_index[0]
    col = edge_index[1]
    # gather structure: one-hot in bf16 (exact 0/1; half the HBM/VMEM footprint)
    row_oh = jax.nn.one_hot(row, n_nodes, dtype=jnp.bfloat16)          # [E, N]
    col_oh = jax.nn.one_hot(col, n_nodes, dtype=jnp.bfloat16)
    cnt = jnp.maximum(jnp.zeros((n_nodes,), jnp.float32).at[row].add(1.0), 1.0)
    inv_cnt = (1.0 / cnt)[:, None]                                     # [N, 1] reused by all layers

    # ---- condition encoder (fused: emb_in -> 3x EGCL -> emb_out -> max-pool -> fc) ----
    ce = params["cond"]
    id_emb = ce["id_embedding"][ids]                                   # [N, 16] (glue gather)
    c_in = jnp.concatenate([cond_feat, id_emb], axis=-1)
    mask_ng = jax.nn.one_hot(batch, batch_size, dtype=jnp.float32)     # [N, G]
    embed = pallas_cond_encoder(c_in, x_coord, row_oh, col_oh, inv_cnt, edge_attr,
                                mask_ng, *ce["emb_in"], stack_layers(ce["gcl"]),
                                *ce["emb_out"], *ce["fc"],
                                n_layers=3, batch_size=batch_size)     # [G, cond_channels]

    # FiLM parameters (same reshape semantics as the reference)
    embed = embed.reshape(num_layers, batch_size, 2, f_dim)
    scales = embed[:, :, 0, :]                                         # [L, G, F]
    biases = embed[:, :, 1, :]
    scales_n = scales[:, batch, :]                                     # [L, N, F] (glue gather)
    biases_n = biases[:, batch, :]

    # ---- fused denoising EGNN (embeddings + L FiLM-EGCL layers in one kernel) ----
    h_v, x_v = pallas_denoise(x_flat, te_node, x_coord, row_oh, col_oh, inv_cnt,
                              edge_attr, scales_n, biases_n,
                              *params["node_emb"], *params["edge_emb"],
                              stack_layers(params["layers"]), n_layers=num_layers)

    # node prediction head (fused 3-layer MLP kernel, row-tiled, parallel)
    npred = pallas_mlp(h_v, [params["np1"], params["np2"], params["np3"]],
                       ("relu", "relu", "none"))
    npred = npred.reshape(-1, cfg["pred_horizon"], cfg["node_feature_dim"])
    return npred, x_v


# ----------------------------------------------------------------------------- #
# Demo
# ----------------------------------------------------------------------------- #
if __name__ == "__main__":
    cfg = dict(
        node_feature_dim=3,
        cond_feature_dim=3,
        obs_horizon=2,
        pred_horizon=4,
        edge_feature_dim=1,
        num_layers=2,
        hidden_dim=32,
        dse_dim=32,                 # diffusion_step_embed_dim
        num_diffusion_steps=16,
    )

    key = jax.random.PRNGKey(0)
    k_x, k_c, k_coord, k_ea, k_p = jax.random.split(key, 5)

    n_nodes = 8
    batch = jnp.array([0, 0, 0, 0, 1, 1, 1, 1], jnp.int32)
    batch_size = 2                                            # = batch[-1] + 1

    edges = []
    for base in (0, 4):
        for (a, b) in [(0, 1), (1, 0), (1, 2), (2, 1), (2, 3), (3, 2)]:
            edges.append((base + a, base + b))
    edge_index = jnp.array(edges, jnp.int32).T                # [2, 12]

    x = jax.random.normal(k_x, (n_nodes, cfg["pred_horizon"], cfg["node_feature_dim"]), jnp.float32)
    x_coord = jax.random.normal(k_coord, (n_nodes, 3), jnp.float32)
    edge_attr = jax.random.normal(k_ea, (edge_index.shape[1],), jnp.float32)
    ids = jnp.arange(n_nodes, dtype=jnp.int32) % 30
    cond_feats = jax.random.normal(k_c, (n_nodes, cfg["obs_horizon"], cfg["cond_feature_dim"]), jnp.float32)
    cond = jnp.concatenate(
        [cond_feats,
         jnp.broadcast_to(ids.astype(jnp.float32)[:, None, None], (n_nodes, cfg["obs_horizon"], 1))],
        axis=-1)                                              # last channel carries ids
    timesteps = jnp.array([3, 11], jnp.int32)                 # one per graph

    params = build_params(k_p, cfg)

    node_pred, x_v = forward(params, cfg, x, edge_index, edge_attr, x_coord, cond,
                             timesteps, batch, batch_size)
    jax.block_until_ready((node_pred, x_v))

    assert node_pred.shape == (n_nodes, cfg["pred_horizon"], cfg["node_feature_dim"])
    assert x_v.shape == (n_nodes, 3)
    assert node_pred.dtype == jnp.float32 and x_v.dtype == jnp.float32
    assert bool(jnp.all(jnp.isfinite(node_pred))) and bool(jnp.all(jnp.isfinite(x_v)))
    print("KERNEL_OK")
</pallas_src>

<mosaic_0001>
module attributes {stable_mosaic.version = 11 : i64} {
  func.func @_mlp_kernel(%arg0: i32, %arg1: memref<2x32xf32, #tpu.memory_space<vmem>>, %arg2: memref<32x128xf32, #tpu.memory_space<vmem>>, %arg3: memref<1x128xf32, #tpu.memory_space<vmem>>, %arg4: memref<128x32xf32, #tpu.memory_space<vmem>>, %arg5: memref<1x32xf32, #tpu.memory_space<vmem>>, %arg6: memref<2x32xf32, #tpu.memory_space<vmem>>) attributes {dimension_semantics = [#tpu.dimension_semantics<parallel>], iteration_bounds = array<i64: 1>, scalar_prefetch = 0 : i64, scratch_operands = 0 : i64, tpu.core_type = #tpu.core_type<tc>, window_params = [{transform_indices = @transform_0, window_bounds = array<i64: 2, 32>}, {pipeline_mode = #tpu.pipeline_mode<synchronous>, transform_indices = @transform_1, window_bounds = array<i64: 32, 128>}, {pipeline_mode = #tpu.pipeline_mode<synchronous>, transform_indices = @transform_2, window_bounds = array<i64: 1, 128>}, {pipeline_mode = #tpu.pipeline_mode<synchronous>, transform_indices = @transform_3, window_bounds = array<i64: 128, 32>}, {pipeline_mode = #tpu.pipeline_mode<synchronous>, transform_indices = @transform_4, window_bounds = array<i64: 1, 32>}, {transform_indices = @transform_5, window_bounds = array<i64: 2, 32>}]} {
    %c0 = arith.constant 0 : index
    %c0_0 = arith.constant 0 : index
    %0 = vector.load %arg1[%c0, %c0_0] : memref<2x32xf32, #tpu.memory_space<vmem>>, vector<2x32xf32>
    %c0_1 = arith.constant 0 : index
    %c0_2 = arith.constant 0 : index
    %1 = vector.load %arg2[%c0_1, %c0_2] : memref<32x128xf32, #tpu.memory_space<vmem>>, vector<32x128xf32>
    %c0_3 = arith.constant 0 : index
    %c0_4 = arith.constant 0 : index
    %2 = vector.load %arg3[%c0_3, %c0_4] : memref<1x128xf32, #tpu.memory_space<vmem>>, vector<1x128xf32>
    %cst = arith.constant dense<0.000000e+00> : vector<2x128xf32>
    %3 = tpu.matmul %0, %1, %cst {dimension_numbers = #tpu.dot_dimension_numbers<[1], [0], [0], [1], [0, 0, 1, 1], [], []>} : vector<2x32xf32>, vector<32x128xf32>, vector<2x128xf32> -> vector<2x128xf32>
    %4 = vector.broadcast %2 : vector<1x128xf32> to vector<2x128xf32>
    %5 = arith.addf %3, %4 : vector<2x128xf32>
    %cst_5 = arith.constant 0.000000e+00 : f32
    %6 = vector.broadcast %cst_5 : f32 to vector<2x128xf32>
    %7 = arith.maximumf %5, %6 : vector<2x128xf32>
    %8 = math.absf %5 : vector<2x128xf32>
    %cst_6 = arith.constant 0.000000e+00 : f32
    %9 = vector.broadcast %cst_6 : f32 to vector<2x128xf32>
    %10 = arith.subf %9, %8 : vector<2x128xf32>
    %11 = math.exp %10 : vector<2x128xf32>
    %cst_7 = arith.constant 1.000000e+00 : f32
    %12 = vector.broadcast %cst_7 : f32 to vector<2x128xf32>
    %13 = arith.addf %12, %11 : vector<2x128xf32>
    %14 = math.log %13 : vector<2x128xf32>
    %15 = arith.addf %7, %14 : vector<2x128xf32>
    %16 = math.tanh %15 : vector<2x128xf32>
    %17 = arith.mulf %5, %16 : vector<2x128xf32>
    %c0_8 = arith.constant 0 : index
    %c0_9 = arith.constant 0 : index
    %18 = vector.load %arg4[%c0_8, %c0_9] : memref<128x32xf32, #tpu.memory_space<vmem>>, vector<128x32xf32>
    %c0_10 = arith.constant 0 : index
    %c0_11 = arith.constant 0 : index
    %19 = vector.load %arg5[%c0_10, %c0_11] : memref<1x32xf32, #tpu.memory_space<vmem>>, vector<1x32xf32>
    %cst_12 = arith.constant dense<0.000000e+00> : vector<2x32xf32>
    %20 = tpu.matmul %17, %18, %cst_12 {dimension_numbers = #tpu.dot_dimension_numbers<[1], [0], [0], [1], [0, 0, 1, 1], [], []>} : vector<2x128xf32>, vector<128x32xf32>, vector<2x32xf32> -> vector<2x32xf32>
    %21 = vector.broadcast %19 : vector<1x32xf32> to vector<2x32xf32>
    %22 = arith.addf %20, %21 : vector<2x32xf32>
    %c0_13 = arith.constant 0 : index
    %c0_14 = arith.constant 0 : index
    %23 = vector.load %arg6[%c0_13, %c0_14] : memref<2x32xf32, #tpu.memory_space<vmem>>, vector<2x32xf32>
    tpu.vector_store %arg6[%c0_13, %c0_14], %22 {strides = array<i32>} : memref<2x32xf32, #tpu.memory_space<vmem>>, vector<2x32xf32>,
    return
  }
  func.func @transform_0(%arg0: i32) -> (i32, i32) {
    %c0_i32 = arith.constant 0 : i32
    %c0_i32_0 = arith.constant 0 : i32
    return %arg0, %c0_i32 : i32, i32
  }
  func.func @transform_1(%arg0: i32) -> (i32, i32) {
    %c0_i32 = arith.constant 0 : i32
    %c0_i32_0 = arith.constant 0 : i32
    %c0_i32_1 = arith.constant 0 : i32
    return %c0_i32, %c0_i32_0 : i32, i32
  }
  func.func @transform_2(%arg0: i32) -> (i32, i32) {
    %c0_i32 = arith.constant 0 : i32
    %c0_i32_0 = arith.constant 0 : i32
    %c0_i32_1 = arith.constant 0 : i32
    return %c0_i32, %c0_i32_0 : i32, i32
  }
  func.func @transform_3(%arg0: i32) -> (i32, i32) {
    %c0_i32 = arith.constant 0 : i32
    %c0_i32_0 = arith.constant 0 : i32
    %c0_i32_1 = arith.constant 0 : i32
    return %c0_i32, %c0_i32_0 : i32, i32
  }
  func.func @transform_4(%arg0: i32) -> (i32, i32) {
    %c0_i32 = arith.constant 0 : i32
    %c0_i32_0 = arith.constant 0 : i32
    %c0_i32_1 = arith.constant 0 : i32
    return %c0_i32, %c0_i32_0 : i32, i32
  }
  func.func @transform_5(%arg0: i32) -> (i32, i32) {
    %c0_i32 = arith.constant 0 : i32
    %c0_i32_0 = arith.constant 0 : i32
    return %arg0, %c0_i32 : i32, i32
  }
}

</mosaic_0001>

<bundles_post_ra>
// kernel: tpu_custom_call.1
= control target key start
LH: loop header
LB: loop body
LE: loop exit
PB: predicated region body
PF: predicated region fallthrough
CT: control target
= control target key end

     0   :  { %v362_v3 = vmov 0.0|0.0   ;;  %vm363_vm0 = vmmov 0   ;;  %v364_v6 = vmov 0.0   ;;  %s477_s0 = inlined_call_operand.vmem [shape: f32[2,32], index: 0, kind: input, shape index: {}]   ;;  %s478_s1 = inlined_call_operand.vmem [shape: f32[32,128], index: 1, kind: input, shape index: {}]   ;;  %s479_s2 = inlined_call_operand.vmem [shape: f32[1,128], index: 2, kind: input, shape index: {}]   ;;  %s480_s3 = inlined_call_operand.vmem [shape: f32[128,32], index: 3, kind: input, shape index: {}]   ;;  %s481_s4 = inlined_call_operand.vmem [shape: f32[1,32], index: 4, kind: input, shape index: {}]   ;;  %s482_s5 = inlined_call_operand.hbm [shape: f32[2,32], index: 5, kind: output, shape index: {}]  }
   0x1   :  { %v22_v0 = vld [vmem:[%s478_s1] sm:$0xff]  ;;  %v23_v1 = vld [vmem:[%s478_s1 + $0x8] sm:$0xff]  ;;  %v24_v2 = vld [vmem:[%s478_s1 + $0x10] sm:$0xff]  ;;  %298 = vmatprep.subr.bf16.mxu0 %v362_v3  ;;  %260 = vmatprep.mubr.msk.f32.mxu0 %vm363_vm0, %v364_v6 }
   0x2   :  { %v299_v4 = vpack.c.bf16 %v23_v1, %v22_v0  ;;  %v25_v5 = vld [vmem:[%s478_s1 + $0x18] sm:$0xff]  ;;  %304 = vmatprep.subr.bf16.mxu1 %v362_v3  ;;  %295 = vmatprep.mubr.msk.f32.mxu1 %vm363_vm0, %v364_v6 }
   0x3   :  { %10 = vsyncpa [#allocation3], 0  ;;  %v302_v7 = vpack.c.bf16 %v25_v5, %v24_v2  ;;  %v21_v8 = vld [vmem:[%s477_s0] sm:$0x3]  ;;  %vm33_vm1 = vcmask 261120   ;;  %v119_v10 = vld [vmem:[%s480_s3 + $0x8] sm:$0xff] }
   0x4   :  { %300 = vmatpush3.bf16.msra.mxu0 %v299_v4  ;;  %v118_v9 = vld [vmem:[%s480_s3] sm:$0xff]  ;;  %v120_v12 = vld [vmem:[%s480_s3 + $0x10] sm:$0xff]  ;;  %v121_v13 = vld [vmem:[%s480_s3 + $0x18] sm:$0xff]  ;;  %s365_s9 = smov [#allocation2]   ;;  %vm211_vm2 = vcmask 254976  }
   0x5   :  { %301 = vmatprep.subr.bf16.mxu0 %v362_v3  ;;  %v305_v11 = vpack.c.bf16 %v119_v10, %v118_v9  ;;  %v308_v14 = vpack.c.bf16 %v121_v13, %v120_v12  ;;  %v122_v15 = vld [vmem:[%s480_s3 + $0x20] sm:$0xff]  ;;  %v123_v16 = vld [vmem:[%s480_s3 + $0x28] sm:$0xff]  ;;  %v124_v18 = vld [vmem:[%s480_s3 + $0x30] sm:$0xff]  ;;  %s219_s0 = sshll.u32 %s365_s9, 4  ;;  %s220_s0 = int_to_ptr.vmem [resolvable:$true] %s219_s0 }
   0x6   :  { %v311_v17 = vpack.c.bf16 %v123_v16, %v122_v15  ;;  %v125_v19 = vld [vmem:[%s480_s3 + $0x38] sm:$0xff]  ;;  %v126_v21 = vld [vmem:[%s480_s3 + $0x40] sm:$0xff]  ;;  %v127_v22 = vld [vmem:[%s480_s3 + $0x48] sm:$0xff]  ;;  %s338_s10 = scalar_lea.vmem %s220_s0, 32  ;;  %p343_p1 = scmp.lt.s32.totalorder %s220_s0, %s220_s0 }
   0x7   :  { %306 = vmatpush3.bf16.msra.mxu1 %v305_v11  ;;  %v314_v20 = vpack.c.bf16 %v125_v19, %v124_v18  ;;  %v317_v23 = vpack.c.bf16 %v127_v22, %v126_v21  ;;  %v128_v24 = vld [vmem:[%s480_s3 + $0x50] sm:$0xff]  ;;  %v129_v25 = vld [vmem:[%s480_s3 + $0x58] sm:$0xff]  ;;  %v130_v27 = vld [vmem:[%s480_s3 + $0x60] sm:$0xff]  ;;  %p339_p0 = scmp.ne.s32.totalorder %s220_s0, %s338_s10  ;;  %p344_p2 = scmp.lt.s32.totalorder %s338_s10, %s338_s10 }
   0x8   :  { %303 = vmatpush3.bf16.msra.mxu0 %v302_v7  ;;  %307 = vmatprep.subr.bf16.mxu1 %v362_v3  ;;  %v320_v26 = vpack.c.bf16 %v129_v25, %v128_v24  ;;  %v131_v28 = vld [vmem:[%s480_s3 + $0x68] sm:$0xff]  ;;  %v132_v30 = vld [vmem:[%s480_s3 + $0x70] sm:$0xff]  ;;  %v133_v31 = vld [vmem:[%s480_s3 + $0x78] sm:$0xff] }
   0x9   :  { %v323_v29 = vpack.c.bf16 %v131_v28, %v130_v27  ;;  %v326_v32 = vpack.c.bf16 %v133_v31, %v132_v30  ;;  %v227_v33 = vld [vmem:[%s479_s2] ss:$0 sm:$0xff]  ;;  %p345_p3 = por %p344_p2, %p343_p1 }
   0xa   :  { %v229_v48 = vld [vmem:[%s481_s4] ss:$0 sm:$0xff] }
   0xb   :  { %261 = vmatmul.mubr.msk.f32.vlgmr.msra.gmra.mrb[0].mxu0 %vm33_vm1, %v21_v8  ;;  %309 = vmatpush3.bf16.msra.mxu1 %v308_v14  ;;  %p346_p4 = pnand %p345_p3, %p339_p0 }
   0xc   :  { %310 = vmatprep.subr.bf16.mxu1 %v362_v3 }
   0xf   :  { %312 = vmatpush3.bf16.msra.mxu1 %v311_v17 }
  0x10   :  { %313 = vmatprep.subr.bf16.mxu1 %v362_v3 }
  0x13   :  { %315 = vmatpush3.bf16.msra.mxu1 %v314_v20 }
  0x14   :  { %316 = vmatprep.subr.bf16.mxu1 %v362_v3 }
  0x17   :  { %318 = vmatpush3.bf16.msra.mxu1 %v317_v23 }
  0x18   :  { %319 = vmatprep.subr.bf16.mxu1 %v362_v3 }
  0x1b   :  { %321 = vmatpush3.bf16.msra.mxu1 %v320_v26 }
  0x1c   :  { %322 = vmatprep.subr.bf16.mxu1 %v362_v3 }
  0x1f   :  { %324 = vmatpush3.bf16.msra.mxu1 %v323_v29 }
  0x20   :  { %325 = vmatprep.subr.bf16.mxu1 %v362_v3 }
  0x23   :  { %327 = vmatpush3.bf16.msra.mxu1 %v326_v32 }
  0xde   :  { %v103_v34 = vpop.f32.mrb[0].mxu0 }
  0xdf   :  { %v104_v35 = vadd.f32 %v227_v33, %v103_v34  ;;  %v262_v36 = vpop.f32.mrb[1].mxu0 }
  0xe1   :  { %v108_v37 = vand.u32 2147483647, %v104_v35  ;;  %v107_v43 = vmax.f32 %v104_v35, 0.0 }
  0xe3   :  { %v109_v38 = vsub.f32 0.0, %v108_v37 }
  0xe5   :  { %v110_v39 = vmul.f32 1.442695, %v109_v38 }
  0xe7   :  { %332 = vpow2.f32 %v110_v39 }
  0xf1   :  { %v333_v40 = vpop.eup %332 }
  0xf2   :  { %v112_v41 = vadd.f32 1.0, %v333_v40 }
  0xf4   :  { %334 = vlog2.f32 %v112_v41 }
  0xfe   :  { %v335_v42 = vpop.eup %334 }
  0xff   :  { %v114_v44 = vmul.f32 0.6931472, %v335_v42 }
 0x101   :  { %v115_v45 = vadd.f32 %v114_v44, %v107_v43 }
 0x103   :  { %336 = vtanh.f32 %v115_v45 }
 0x10d   :  { %v337_v46 = vpop.eup %336 }
 0x10e   :  { %v117_v47 = vmul.f32 %v337_v46, %v104_v35 }
 0x110   :  { %296 = vmatmul.mubr.f32.vlgmr.msra.gmra.mrb[0].mxu1 %v117_v47 }
 0x1e3   :  { %v207_v49 = vpop.f32.mrb[0].mxu1 }
 0x1e4   :  { %v208_v50 = vadd.f32 %v229_v48, %v207_v49  ;;  %v297_v51 = vpop.f32.mrb[1].mxu1 }
 0x1e6   :  { %212 = vst.msk [vmem:[#allocation2] sm:$0x3] %vm211_vm2, %v208_v50 }
 0x1e7   :  { %349 = shalt.err (!%p346_p4)
}
 0x1e8   :  { %s350_s13 = scalar_lea.hbm %s482_s5, 32 }
 0x1e9   :  { %p351_p5 = scmp.ne.s32.totalorder %s482_s5, %s350_s13  ;;  %p354_p6 = scmp.lt.u32.totalorder %s350_s13, %s482_s5 }
 0x1eb   :  { %p356_p7 = pnand %p354_p6, %p351_p5 }
 0x1ed   :  { %359 = shalt.err (!%p356_p7)
}
 0x1ee   :  { %222 = dma.vmem_to_hbm [thread:$0]  %s220_s0, 32, %s482_s5, [#allocation3]  }
 0x1ef   :  { %360 = dma.done.wait [#allocation3], 32  }
 0x1f0   :  { %361 = vsyncadd [#allocation3], 4294967264 }
 0x1f1   :  { %226 = vsyncpa [#allocation3], 1 }

</bundles_post_ra>
